<compile_context>
chip_gen: v7x
topology: tpu7x:2x2x1
jax: 0.10.0
libtpu: 0.0.40
codegen_flags: <defaults>
</compile_context>

<pallas_src>
import functools
import math

import jax
import jax.numpy as jnp
from jax.experimental import pallas as pl
from jax.experimental.pallas import tpu as pltpu

EPS = 1e-6            # epsilon used by reduce_masked_mean (utils.basic)
LANES = 128
SUBLANES = 8
SUB_ROWS_MAX = 2048   # compute sub-chunk rows: bounds f32 temporaries to ~1 MiB each


def _tpu_kind() -> str:
    try:
        return jax.devices()[0].device_kind.lower()
    except Exception:
        return ""


def _chunk_partials(x, y, v, *, pos_weight, row_offset, rows, masked):
    """(sub_rows, 128) chunk -> ((8,128) num_partial, (8,128) den_partial)."""
    x = x.astype(jnp.float32)
    y = y.astype(jnp.float32)
    v = v.astype(jnp.float32)
    # Numerically-stable BCEWithLogitsLoss with pos_weight p:
    #   loss = (1 - y) * x + (1 + (p - 1) * y) * softplus(-x)
    #   softplus(-x) = max(-x, 0) + log1p(exp(-|x|))
    sp_neg_x = jnp.maximum(-x, 0.0) + jnp.log1p(jnp.exp(-jnp.abs(x)))
    loss = (1.0 - y) * x + (1.0 + (pos_weight - 1.0) * y) * sp_neg_x
    num = loss * v
    den = v
    if masked:
        # Mask the *products* so garbage (possibly non-finite) data in the
        # ragged / clamped-duplicate region cannot poison the sums.
        sub_rows = x.shape[0]
        rid = jax.lax.broadcasted_iota(jnp.int32, (sub_rows, LANES), 0)
        keep = (row_offset + rid) < rows
        num = jnp.where(keep, num, 0.0)
        den = jnp.where(keep, den, 0.0)
    # (sub_rows,128) -> (8,128) with pure VPU adds (no XLU cross-lane reduce).
    g = num.shape[0] // SUBLANES
    num_p = jnp.sum(num.reshape(g, SUBLANES, LANES), axis=0)
    den_p = jnp.sum(den.reshape(g, SUBLANES, LANES), axis=0)
    return num_p, den_p


def _bce_masked_sum_kernel(yp_ref, yt_ref, vl_ref, out_ref, *,
                           pos_weight, tile_rows, sub_rows, rows,
                           num_blocks, need_mask):
    c = pl.program_id(0)   # core-parallel axis
    i = pl.program_id(1)   # sequential reduction axis (carried accumulator)

    @pl.when(i == 0)
    def _():
        out_ref[...] = jnp.zeros_like(out_ref)

    blk = c * pl.num_programs(1) + i     # logical block id (before clamping)
    n_sub = tile_rows // sub_rows

    def block_partials(masked):
        if n_sub == 1:
            return _chunk_partials(
                yp_ref[...], yt_ref[...], vl_ref[...],
                pos_weight=pos_weight, row_offset=blk * tile_rows,
                rows=rows, masked=masked)

        def body(j, carry):
            na, da = carry
            r0 = pl.multiple_of(j * sub_rows, sub_rows)
            np_, dp_ = _chunk_partials(
                yp_ref[pl.ds(r0, sub_rows), :],
                yt_ref[pl.ds(r0, sub_rows), :],
                vl_ref[pl.ds(r0, sub_rows), :],
                pos_weight=pos_weight, row_offset=blk * tile_rows + r0,
                rows=rows, masked=masked)
            return na + np_, da + dp_

        z = jnp.zeros((SUBLANES, LANES), jnp.float32)
        return jax.lax.fori_loop(0, n_sub, body, (z, z))

    def accumulate(masked):
        num_p, den_p = block_partials(masked)
        out_ref[0, 0, :, :] += num_p
        out_ref[0, 1, :, :] += den_p

    if not need_mask:
        accumulate(False)
    else:
        # Only the last real block (ragged) and clamped duplicates need masking;
        # interior blocks take the unmasked fast path.
        is_edge = blk >= (num_blocks - 1)

        @pl.when(jnp.logical_not(is_edge))
        def _():
            accumulate(False)

        @pl.when(is_edge)
        def _():
            accumulate(True)


def simple_loss(ypred, ytgt, valid, pos_weight: float):
    """Pallas analogue of SimpleLoss(pos_weight).forward(ypred, ytgt, valid)."""
    assert ypred.shape == ytgt.shape == valid.shape
    n = int(ypred.size)

    kind = _tpu_kind()
    is_v7 = ("v7" in kind) or ("tpu7" in kind)
    # v7x: 2 TensorCores, 64 MiB VMEM, ~3.2 TB/s/TC -> bigger blocks + core split.
    # v5e/v6e: 1 TensorCore -> no core axis (avoids clamped duplicate blocks).
    ncores_max = 2 if is_v7 else 1
    max_tile_rows = 8192 if is_v7 else 4096
    vmem_limit = 48 * 1024 * 1024   # fits v7x's 64 MiB physical; plenty elsewhere

    rows = max(SUBLANES, pl.cdiv(n, LANES))
    pad = rows * LANES - n   # 0 whenever n % 128 == 0 (both examples below)

    def _as_rows(a):
        flat = a.reshape(-1)                      # free bitcast-style reshape
        if pad:
            # TODO(synk): fold the sub-128-element ragged tail into num/den with
            # a tiny JAX epilogue instead of this (rare) full-copy pad.
            flat = jnp.pad(flat, (0, pad))
        return flat.reshape(rows, LANES)

    yp2, yt2, vl2 = _as_rows(ypred), _as_rows(ytgt), _as_rows(valid)

    tile_rows = min(max_tile_rows, SUBLANES * (rows // SUBLANES))
    sub_rows = SUBLANES * math.gcd(tile_rows // SUBLANES, SUB_ROWS_MAX // SUBLANES)
    num_blocks = pl.cdiv(rows, tile_rows)
    ncores = min(ncores_max, num_blocks)
    n_steps = pl.cdiv(num_blocks, ncores)
    # Masking needed if the last block is ragged or there are clamped duplicates.
    need_mask = (num_blocks * tile_rows != rows) or (ncores * n_steps != num_blocks)

    def in_map(c, i):
        blk = c * n_steps + i
        if ncores * n_steps != num_blocks:
            blk = jnp.minimum(blk, num_blocks - 1)   # duplicates are masked out
        return (blk, 0)

    kernel = functools.partial(
        _bce_masked_sum_kernel,
        pos_weight=float(pos_weight),
        tile_rows=tile_rows,
        sub_rows=sub_rows,
        rows=rows,
        num_blocks=num_blocks,
        need_mask=need_mask,
    )

    in_spec = pl.BlockSpec((tile_rows, LANES), in_map)
    n_eff = rows * LANES
    cost = pl.CostEstimate(
        flops=16 * n_eff,
        transcendentals=2 * n_eff,
        bytes_accessed=(yp2.size * yp2.dtype.itemsize
                        + yt2.size * yt2.dtype.itemsize
                        + vl2.size * vl2.dtype.itemsize
                        + ncores * 2 * SUBLANES * LANES * 4),
    )

    partials = pl.pallas_call(
        kernel,
        out_shape=jax.ShapeDtypeStruct((ncores, 2, SUBLANES, LANES), jnp.float32),
        grid_spec=pltpu.PrefetchScalarGridSpec(
            num_scalar_prefetch=0,
            grid=(ncores, n_steps),
            in_specs=[in_spec, in_spec, in_spec],
            out_specs=pl.BlockSpec((1, 2, SUBLANES, LANES),
                                   lambda c, i: (c, 0, 0, 0)),
        ),
        compiler_params=pltpu.CompilerParams(
            # TODO(synk): verify on v7x that "parallel" really shards the leading
            # axis across both TensorCores; if one TC is idle, switch that axis
            # to pltpu.CORE_PARALLEL (or restructure via pl.core_map).
            dimension_semantics=("parallel", "arbitrary"),
            vmem_limit_bytes=vmem_limit),
        cost_estimate=cost,
    )(yp2, yt2, vl2)

    # reduce_masked_mean: sum(loss * valid) / (EPS + sum(valid))
    num = jnp.sum(partials[:, 0])
    den = jnp.sum(partials[:, 1])
    return num / (EPS + den)


def _reference(ypred, ytgt, valid, pos_weight):
    x = ypred.astype(jnp.float32)
    y = ytgt.astype(jnp.float32)
    v = valid.astype(jnp.float32)
    loss = (1.0 - y) * x + (1.0 + (pos_weight - 1.0) * y) * jax.nn.softplus(-x)
    return jnp.sum(loss * v) / (EPS + jnp.sum(v))


def _make_inputs(key, shape):
    k1, k2, k3 = jax.random.split(key, 3)
    ypred = jax.random.normal(k1, shape, dtype=jnp.float32)
    ytgt = (jax.random.uniform(k2, shape) > 0.5).astype(jnp.float32)
    valid = (jax.random.uniform(k3, shape) > 0.3).astype(jnp.float32)
    return ypred, ytgt, valid


if __name__ == "__main__":
    pos_weight = 2.13  # deterministic, from module __init__ argument
    key = jax.random.PRNGKey(0)
    k_small, k_big = jax.random.split(key, 2)

    # Primary small example (B, C, H, W) = (2, 4, 16, 16).
    ypred, ytgt, valid = _make_inputs(k_small, (2, 4, 16, 16))
    out = simple_loss(ypred, ytgt, valid, pos_weight)
    out = jax.block_until_ready(out)
    ref = _reference(ypred, ytgt, valid, pos_weight)
    assert jnp.allclose(out, ref, rtol=1e-5, atol=1e-5), (out, ref)

    # Secondary check: multi-block, ragged last block (no wrapper pad), masked path.
    ypred2, ytgt2, valid2 = _make_inputs(k_big, (2, 4, 260, 260))
    out2 = simple_loss(ypred2, ytgt2, valid2, pos_weight)
    out2 = jax.block_until_ready(out2)
    ref2 = _reference(ypred2, ytgt2, valid2, pos_weight)
    assert jnp.allclose(out2, ref2, rtol=1e-5, atol=1e-5), (out2, ref2)

    print("KERNEL_OK")
</pallas_src>

<mosaic_0001>
module attributes {stable_mosaic.version = 11 : i64} {
  func.func @_bce_masked_sum_kernel(%arg0: i32, %arg1: i32, %arg2: memref<16x128xf32, #tpu.memory_space<vmem>>, %arg3: memref<16x128xf32, #tpu.memory_space<vmem>>, %arg4: memref<16x128xf32, #tpu.memory_space<vmem>>, %arg5: memref<1x2x8x128xf32, #tpu.memory_space<vmem>>) attributes {dimension_semantics = [#tpu.dimension_semantics<parallel>, #tpu.dimension_semantics<arbitrary>], iteration_bounds = array<i64: 1, 1>, scalar_prefetch = 0 : i64, scratch_operands = 0 : i64, tpu.core_type = #tpu.core_type<tc>, window_params = [{transform_indices = @transform_0, window_bounds = array<i64: 16, 128>}, {transform_indices = @transform_1, window_bounds = array<i64: 16, 128>}, {transform_indices = @transform_2, window_bounds = array<i64: 16, 128>}, {transform_indices = @transform_3, window_bounds = array<i64: 1, 2, 8, 128>}]} {
    %c0_i32 = arith.constant 0 : i32
    %0 = arith.cmpi eq, %arg1, %c0_i32 : i32
    %1 = arith.extui %0 : i1 to i32
    %c0_i32_0 = arith.constant 0 : i32
    %2 = arith.cmpi ne, %1, %c0_i32_0 : i32
    scf.if %2 {
      %cst_28 = arith.constant 0.000000e+00 : f32
      %42 = vector.broadcast %cst_28 : f32 to vector<1x2x8x128xf32>
      %c0_29 = arith.constant 0 : index
      %c0_30 = arith.constant 0 : index
      %c0_31 = arith.constant 0 : index
      %c0_32 = arith.constant 0 : index
      %43 = vector.load %arg5[%c0_29, %c0_30, %c0_31, %c0_32] : memref<1x2x8x128xf32, #tpu.memory_space<vmem>>, vector<1x2x8x128xf32>
      tpu.vector_store %arg5[%c0_29, %c0_30, %c0_31, %c0_32], %42 {strides = array<i32>} : memref<1x2x8x128xf32, #tpu.memory_space<vmem>>, vector<1x2x8x128xf32>,
    } else {
    }
    %c0 = arith.constant 0 : index
    %c0_1 = arith.constant 0 : index
    %3 = vector.load %arg2[%c0, %c0_1] : memref<16x128xf32, #tpu.memory_space<vmem>>, vector<16x128xf32>
    %c0_2 = arith.constant 0 : index
    %c0_3 = arith.constant 0 : index
    %4 = vector.load %arg3[%c0_2, %c0_3] : memref<16x128xf32, #tpu.memory_space<vmem>>, vector<16x128xf32>
    %c0_4 = arith.constant 0 : index
    %c0_5 = arith.constant 0 : index
    %5 = vector.load %arg4[%c0_4, %c0_5] : memref<16x128xf32, #tpu.memory_space<vmem>>, vector<16x128xf32>
    %cst = arith.constant 0.000000e+00 : f32
    %6 = vector.broadcast %cst : f32 to vector<16x128xf32>
    %7 = arith.subf %6, %3 : vector<16x128xf32>
    %cst_6 = arith.constant 0.000000e+00 : f32
    %8 = vector.broadcast %cst_6 : f32 to vector<16x128xf32>
    %9 = arith.maximumf %7, %8 : vector<16x128xf32>
    %10 = math.absf %3 : vector<16x128xf32>
    %cst_7 = arith.constant 0.000000e+00 : f32
    %11 = vector.broadcast %cst_7 : f32 to vector<16x128xf32>
    %12 = arith.subf %11, %10 : vector<16x128xf32>
    %13 = math.exp %12 : vector<16x128xf32>
    %14 = math.log1p %13 : vector<16x128xf32>
    %15 = arith.addf %9, %14 : vector<16x128xf32>
    %cst_8 = arith.constant 1.000000e+00 : f32
    %16 = vector.broadcast %cst_8 : f32 to vector<16x128xf32>
    %17 = arith.subf %16, %4 : vector<16x128xf32>
    %18 = arith.mulf %17, %3 : vector<16x128xf32>
    %cst_9 = arith.constant 1.130000e+00 : f32
    %19 = vector.broadcast %cst_9 : f32 to vector<16x128xf32>
    %20 = arith.mulf %19, %4 : vector<16x128xf32>
    %cst_10 = arith.constant 1.000000e+00 : f32
    %21 = vector.broadcast %cst_10 : f32 to vector<16x128xf32>
    %22 = arith.addf %21, %20 : vector<16x128xf32>
    %23 = arith.mulf %22, %15 : vector<16x128xf32>
    %24 = arith.addf %18, %23 : vector<16x128xf32>
    %25 = arith.mulf %24, %5 : vector<16x128xf32>
    %26 = vector.shape_cast %25 : vector<16x128xf32> to vector<2x8x128xf32>
    %cst_11 = arith.constant dense<0.000000e+00> : vector<8x128xf32>
    %27 = vector.multi_reduction <add>, %26, %cst_11 [0] : vector<2x8x128xf32> to vector<8x128xf32>
    %28 = vector.shape_cast %5 : vector<16x128xf32> to vector<2x8x128xf32>
    %cst_12 = arith.constant dense<0.000000e+00> : vector<8x128xf32>
    %29 = vector.multi_reduction <add>, %28, %cst_12 [0] : vector<2x8x128xf32> to vector<8x128xf32>
    %c0_13 = arith.constant 0 : index
    %c0_14 = arith.constant 0 : index
    %c0_15 = arith.constant 0 : index
    %c0_16 = arith.constant 0 : index
    %30 = vector.load %arg5[%c0_13, %c0_14, %c0_15, %c0_16] : memref<1x2x8x128xf32, #tpu.memory_space<vmem>>, vector<1x1x8x128xf32>
    %31 = vector.shape_cast %30 : vector<1x1x8x128xf32> to vector<8x128xf32>
    %32 = arith.addf %31, %27 : vector<8x128xf32>
    %c0_17 = arith.constant 0 : index
    %c0_18 = arith.constant 0 : index
    %c0_19 = arith.constant 0 : index
    %c0_20 = arith.constant 0 : index
    %33 = vector.load %arg5[%c0_17, %c0_18, %c0_19, %c0_20] : memref<1x2x8x128xf32, #tpu.memory_space<vmem>>, vector<1x1x8x128xf32>
    %34 = vector.shape_cast %33 : vector<1x1x8x128xf32> to vector<8x128xf32>
    %35 = vector.shape_cast %32 : vector<8x128xf32> to vector<1x1x8x128xf32>
    tpu.vector_store %arg5[%c0_17, %c0_18, %c0_19, %c0_20], %35 {strides = array<i32>} : memref<1x2x8x128xf32, #tpu.memory_space<vmem>>, vector<1x1x8x128xf32>,
    %c0_21 = arith.constant 0 : index
    %c1 = arith.constant 1 : index
    %c0_22 = arith.constant 0 : index
    %c0_23 = arith.constant 0 : index
    %36 = vector.load %arg5[%c0_21, %c1, %c0_22, %c0_23] : memref<1x2x8x128xf32, #tpu.memory_space<vmem>>, vector<1x1x8x128xf32>
    %37 = vector.shape_cast %36 : vector<1x1x8x128xf32> to vector<8x128xf32>
    %38 = arith.addf %37, %29 : vector<8x128xf32>
    %c0_24 = arith.constant 0 : index
    %c1_25 = arith.constant 1 : index
    %c0_26 = arith.constant 0 : index
    %c0_27 = arith.constant 0 : index
    %39 = vector.load %arg5[%c0_24, %c1_25, %c0_26, %c0_27] : memref<1x2x8x128xf32, #tpu.memory_space<vmem>>, vector<1x1x8x128xf32>
    %40 = vector.shape_cast %39 : vector<1x1x8x128xf32> to vector<8x128xf32>
    %41 = vector.shape_cast %38 : vector<8x128xf32> to vector<1x1x8x128xf32>
    tpu.vector_store %arg5[%c0_24, %c1_25, %c0_26, %c0_27], %41 {strides = array<i32>} : memref<1x2x8x128xf32, #tpu.memory_space<vmem>>, vector<1x1x8x128xf32>,
    return
  }
  func.func @transform_0(%arg0: i32, %arg1: i32) -> (i32, i32) {
    %c1_i32 = arith.constant 1 : i32
    %0 = arith.muli %arg0, %c1_i32 : i32
    %1 = arith.addi %0, %arg1 : i32
    %c0_i32 = arith.constant 0 : i32
    %c0_i32_0 = arith.constant 0 : i32
    return %1, %c0_i32 : i32, i32
  }
  func.func @transform_1(%arg0: i32, %arg1: i32) -> (i32, i32) {
    %c1_i32 = arith.constant 1 : i32
    %0 = arith.muli %arg0, %c1_i32 : i32
    %1 = arith.addi %0, %arg1 : i32
    %c0_i32 = arith.constant 0 : i32
    %c0_i32_0 = arith.constant 0 : i32
    return %1, %c0_i32 : i32, i32
  }
  func.func @transform_2(%arg0: i32, %arg1: i32) -> (i32, i32) {
    %c1_i32 = arith.constant 1 : i32
    %0 = arith.muli %arg0, %c1_i32 : i32
    %1 = arith.addi %0, %arg1 : i32
    %c0_i32 = arith.constant 0 : i32
    %c0_i32_0 = arith.constant 0 : i32
    return %1, %c0_i32 : i32, i32
  }
  func.func @transform_3(%arg0: i32, %arg1: i32) -> (i32, i32, i32, i32) {
    %c0_i32 = arith.constant 0 : i32
    %c0_i32_0 = arith.constant 0 : i32
    %c0_i32_1 = arith.constant 0 : i32
    %c0_i32_2 = arith.constant 0 : i32
    return %arg0, %c0_i32, %c0_i32_0, %c0_i32_1 : i32, i32, i32, i32
  }
}

</mosaic_0001>

<bundles_post_ra>
// kernel: tpu_custom_call.1
= control target key start
LH: loop header
LB: loop body
LE: loop exit
PB: predicated region body
PF: predicated region fallthrough
CT: control target
= control target key end

     0   :  { %8 = vsyncpa [#allocation3], 0  ;;  %s361_s0 = inlined_call_operand.hbm [shape: f32[16,128], index: 0, kind: input, shape index: {}]   ;;  %s362_s1 = inlined_call_operand.hbm [shape: f32[16,128], index: 1, kind: input, shape index: {}]   ;;  %s363_s2 = inlined_call_operand.hbm [shape: f32[16,128], index: 2, kind: input, shape index: {}]   ;;  %s364_s3 = inlined_call_operand.hbm [shape: f32[1,2,8,128], index: 3, kind: output, shape index: {}]  }
   0x1   :  { %9 = vsyncpa [#allocation6], 0 }
   0x2   :  { %10 = vsyncpa [#allocation4], 0  ;;  %s268_s12 = smov [#allocation5]   ;;  %s269_s14 = smov [#allocation2]  }
   0x3   :  { %s36_s13 = sshll.u32 %s268_s12, 4  ;;  %s20_s15 = sshll.u32 %s269_s14, 4  ;;  %s37_s13 = int_to_ptr.vmem [resolvable:$true] %s36_s13  ;;  %s294_s15 = int_to_ptr.vmem [resolvable:$true] %s20_s15 }
   0x4   :  { %s174_s18 = scalar_lea.hbm %s362_s1, 256 }
   0x5   :  { %p175_p0 = scmp.ne.s32.totalorder %s362_s1, %s174_s18  ;;  %p178_p1 = scmp.lt.u32.totalorder %s174_s18, %s362_s1 }
   0x7   :  { %p180_p2 = pnand %p178_p1, %p175_p0 }
   0x9   :  { %183 = shalt.err (!%p180_p2)
}
   0xa   :  { %s184_s23 = scalar_lea.vmem %s37_s13, 256  ;;  %p189_p4 = scmp.lt.s32.totalorder %s37_s13, %s37_s13 }
   0xb   :  { %p185_p3 = scmp.ne.s32.totalorder %s37_s13, %s184_s23  ;;  %p190_p5 = scmp.lt.s32.totalorder %s184_s23, %s184_s23 }
   0xd   :  { %p191_p6 = por %p190_p5, %p189_p4 }
   0xf   :  { %p192_p7 = pnand %p191_p6, %p185_p3 }
  0x11   :  { %195 = shalt.err (!%p192_p7)
}
  0x12   :  { %s270_s24 = smov 128   ;;  %s271_s25 = smov 8  }
  0x13   :  { %42 = dma.hbm_to_vmem [thread:$0]  %s362_s1, 256, %s37_s13, [#allocation6], %s270_s24, %s270_s24, %s271_s25  }
  0x14   :  { %s196_s30 = scalar_lea.hbm %s361_s0, 256 }
  0x15   :  { %p197_p8 = scmp.ne.s32.totalorder %s361_s0, %s196_s30  ;;  %p200_p9 = scmp.lt.u32.totalorder %s196_s30, %s361_s0 }
  0x17   :  { %p202_p10 = pnand %p200_p9, %p197_p8 }
  0x19   :  { %205 = shalt.err (!%p202_p10)
}
  0x1a   :  { %s206_s8 = scalar_lea.vmem %s294_s15, 256  ;;  %p211_p12 = scmp.lt.s32.totalorder %s294_s15, %s294_s15 }
  0x1b   :  { %p207_p11 = scmp.ne.s32.totalorder %s294_s15, %s206_s8  ;;  %p212_p13 = scmp.lt.s32.totalorder %s206_s8, %s206_s8 }
  0x1d   :  { %p213_p0 = por %p212_p13, %p211_p12 }
  0x1f   :  { %p214_p1 = pnand %p213_p0, %p207_p11 }
  0x21   :  { %217 = shalt.err (!%p214_p1)
}
  0x22   :  { %26 = dma.hbm_to_vmem [thread:$0]  %s361_s0, 256, %s294_s15, [#allocation3], %s270_s24, %s270_s24, %s271_s25  }
  0x23   :  { %s272_s10 = smov [#allocation7]   ;;  %s218_s14 = scalar_lea.hbm %s363_s2, 256 }
  0x24   :  { %s52_s11 = sshll.u32 %s272_s10, 4  ;;  %p219_p2 = scmp.ne.s32.totalorder %s363_s2, %s218_s14  ;;  %s53_s11 = int_to_ptr.vmem [resolvable:$true] %s52_s11 }
  0x25   :  { %p222_p3 = scmp.lt.u32.totalorder %s218_s14, %s363_s2 }
  0x27   :  { %p224_p4 = pnand %p222_p3, %p219_p2 }
  0x29   :  { %227 = shalt.err (!%p224_p4)
}
  0x2a   :  { %s228_s20 = scalar_lea.vmem %s53_s11, 256  ;;  %p233_p6 = scmp.lt.s32.totalorder %s53_s11, %s53_s11 }
  0x2b   :  { %p229_p5 = scmp.ne.s32.totalorder %s53_s11, %s228_s20  ;;  %p234_p7 = scmp.lt.s32.totalorder %s228_s20, %s228_s20 }
  0x2d   :  { %p235_p8 = por %p234_p7, %p233_p6 }
  0x2f   :  { %p236_p9 = pnand %p235_p8, %p229_p5 }
  0x31   :  { %239 = shalt.err (!%p236_p9)
}
  0x32   :  { %58 = dma.hbm_to_vmem [thread:$0]  %s363_s2, 256, %s53_s11, [#allocation6], %s270_s24, %s270_s24, %s271_s25  }
  0x33   :  { %262 = dma.done.wait [#allocation3], 256  }
  0x34   :  { %263 = vsyncadd [#allocation3], 4294967040 }
  0x35   :  { %264 = dma.done.wait [#allocation6], 512  }
  0x36   :  { %265 = vsyncadd [#allocation6], 4294966784  ;;  %v80_v0 = vld [vmem:[#allocation2] sm:$0xff]  ;;  %v81_v1 = vld [vmem:[#allocation2 + $0x8] sm:$0xff]  ;;  %s273_s2 = smov [#allocation8]  }
  0x37   :  { %v84_v2 = vld [vmem:[#allocation7] sm:$0xff]  ;;  %v85_v3 = vld [vmem:[#allocation7 + $0x8] sm:$0xff]  ;;  %v90_v4 = vand.u32 2147483647, %v80_v0  ;;  %v91_v5 = vand.u32 2147483647, %v81_v1 }
  0x38   :  { %v133_v6 = vadd.f32 %v85_v3, %v84_v2  ;;  %v82_v17 = vld [vmem:[#allocation5] sm:$0xff]  ;;  %v83_v19 = vld [vmem:[#allocation5 + $0x8] sm:$0xff]  ;;  %v86_v20 = vsub.f32 0.0, %v80_v0  ;;  %v87_v23 = vsub.f32 0.0, %v81_v1  ;;  %s146_s21 = sshll.u32 %s273_s2, 4  ;;  %s147_s21 = int_to_ptr.vmem [resolvable:$true] %s146_s21 }
  0x39   :  { %v92_v7 = vsub.f32 0.0, %v90_v4  ;;  %v93_v8 = vsub.f32 0.0, %v91_v5  ;;  %v122_v25 = vmul.f32 1.13, %v82_v17  ;;  %v123_v27 = vmul.f32 1.13, %v83_v19  ;;  %p245_p11 = scmp.lt.s32.totalorder %s147_s21, %s147_s21 }
  0x3a   :  { %140 = vst [vmem:[#allocation8 + $0x8] sm:$0xff] %v133_v6  ;;  %v88_v29 = vmax.f32 %v86_v20, 0.0  ;;  %v118_v31 = vsub.f32 1.0, %v82_v17  ;;  %v89_v33 = vmax.f32 %v87_v23, 0.0  ;;  %v119_v35 = vsub.f32 1.0, %v83_v19  ;;  %s240_s22 = scalar_lea.vmem %s147_s21, 256 }
  0x3b   :  { %v94_v9 = vmul.f32 1.442695, %v92_v7  ;;  %v96_v10 = vmul.f32 1.442695, %v93_v8  ;;  %v124_v37 = vadd.f32 1.0, %v122_v25  ;;  %v125_v39 = vadd.f32 1.0, %v123_v27  ;;  %p241_p10 = scmp.ne.s32.totalorder %s147_s21, %s240_s22  ;;  %p246_p12 = scmp.lt.s32.totalorder %s240_s22, %s240_s22 }
  0x3c   :  { %v120_v42 = vmul.f32 %v118_v31, %v80_v0  ;;  %v121_v44 = vmul.f32 %v119_v35, %v81_v1 }
  0x3d   :  { %166 = vpow2.f32 %v94_v9  ;;  %p247_p13 = por %p246_p12, %p245_p11 }
  0x3e   :  { %168 = vpow2.f32 %v96_v10 }
  0x3f   :  { %p248_p0 = pnand %p247_p13, %p241_p10 }
  0x47   :  { %v167_v11 = vpop.eup %166 }
  0x48   :  { %v169_v12 = vpop.eup %168  ;;  %v98_v13 = vadd.f32 1.0, %v167_v11  ;;  %v101_v15 = vmul.f32 -0.5, %v167_v11  ;;  %v104_v21 = vand.u32 2147483647, %v167_v11 }
  0x49   :  { %v107_v14 = vadd.f32 1.0, %v169_v12  ;;  %v110_v16 = vmul.f32 -0.5, %v169_v12  ;;  %v113_v24 = vand.u32 2147483647, %v169_v12 }
  0x4a   :  { %170 = vlog2.f32 %v98_v13  ;;  %v102_v18 = vadd.f32 1.0, %v101_v15  ;;  %vm105_vm0 = vcmp.lt.f32.partialorder %v104_v21, 0.0004427343 }
  0x4b   :  { %172 = vlog2.f32 %v107_v14  ;;  %v111_v22 = vadd.f32 1.0, %v110_v16  ;;  %vm114_vm1 = vcmp.lt.f32.partialorder %v113_v24, 0.0004427343 }
  0x4c   :  { %v103_v26 = vmul.f32 %v167_v11, %v102_v18 }
  0x4d   :  { %v112_v30 = vmul.f32 %v169_v12, %v111_v22 }
  0x54   :  { %v171_v28 = vpop.eup %170 }
  0x55   :  { %v173_v32 = vpop.eup %172  ;;  %v100_v34 = vmul.f32 0.6931472, %v171_v28 }
  0x56   :  { %v109_v36 = vmul.f32 0.6931472, %v173_v32 }
  0x57   :  { %v106_v38 = vsel %vm105_vm0, %v103_v26, %v100_v34 }
  0x58   :  { %v115_v40 = vsel %vm114_vm1, %v112_v30, %v109_v36  ;;  %v116_v41 = vadd.f32 %v106_v38, %v88_v29 }
  0x59   :  { %v117_v43 = vadd.f32 %v115_v40, %v89_v33 }
  0x5a   :  { %v126_v45 = vmul.f32 %v124_v37, %v116_v41 }
  0x5b   :  { %v127_v46 = vmul.f32 %v125_v39, %v117_v43 }
  0x5c   :  { %v128_v47 = vadd.f32 %v126_v45, %v120_v42 }
  0x5d   :  { %v129_v48 = vadd.f32 %v127_v46, %v121_v44 }
  0x5e   :  { %v130_v49 = vmul.f32 %v128_v47, %v84_v2 }
  0x5f   :  { %v131_v50 = vmul.f32 %v129_v48, %v85_v3 }
  0x61   :  { %v132_v51 = vadd.f32 %v131_v50, %v130_v49 }
  0x63   :  { %136 = vst [vmem:[#allocation8] sm:$0xff] %v132_v51 }
  0x64   :  { %251 = shalt.err (!%p248_p0)
}
  0x65   :  { %s252_s27 = scalar_lea.hbm %s364_s3, 256 }
  0x66   :  { %p253_p1 = scmp.ne.s32.totalorder %s364_s3, %s252_s27  ;;  %p256_p2 = scmp.lt.u32.totalorder %s252_s27, %s364_s3 }
  0x68   :  { %p258_p3 = pnand %p256_p2, %p253_p1 }
  0x6a   :  { %261 = shalt.err (!%p258_p3)
}
  0x6b   :  { %152 = dma.vmem_to_hbm [thread:$0]  %s147_s21, 256, %s364_s3, [#allocation4], %s270_s24, %s270_s24, %s271_s25  }
  0x6c   :  { %266 = dma.done.wait [#allocation4], 256  }
  0x6d   :  { %267 = vsyncadd [#allocation4], 4294967040 }
  0x6e   :  { %156 = vsyncpa [#allocation3], 1 }
  0x6f   :  { %157 = vsyncpa [#allocation6], 1 }
  0x70   :  { %158 = vsyncpa [#allocation4], 1 }

</bundles_post_ra>
